<compile_context>
chip_gen: v7x
topology: tpu7x:2x2x1
jax: 0.10.0
libtpu: 0.0.40
codegen_flags: <defaults>
</compile_context>

<pallas_src>
import jax
import jax.numpy as jnp
from jax.experimental import pallas as pl
from jax.experimental.pallas import tpu as pltpu

_LANE = 128          # vreg lane width
_NEG = -1e30         # effectively -inf for padded class logits


def _round_up(n, m):
    return ((n + m - 1) // m) * m


def mlp_softmax_kernel(x_ref, w1_ref, b1_ref, w2_ref, b2_ref, o_ref):
    # hidden = relu(x @ W1 + b1); bf16 (or f32) operands, f32 MXU accumulation.
    x = x_ref[...]
    h = jnp.dot(x, w1_ref[...], preferred_element_type=jnp.float32) + b1_ref[...]
    h = jnp.maximum(h, 0.0)

    # logits = h @ W2 + b2.  Padded class lanes carry a -1e30 f32 bias so
    # their exp() is exactly 0 and they never enter the softmax denominator.
    logits = jnp.dot(h.astype(w2_ref.dtype), w2_ref[...],
                     preferred_element_type=jnp.float32) + b2_ref[...]

    # Numerically-stable softmax over the class axis (== PyTorch dim=1),
    # computed per-row so ragged/garbage padded batch rows cannot pollute
    # valid rows (their writeback is masked off by Pallas anyway).
    m = jnp.max(logits, axis=-1, keepdims=True)
    e = jnp.exp(logits - m)
    denom = jnp.sum(e, axis=-1, keepdims=True)
    o_ref[...] = (e * pl.reciprocal(denom, approx=True)).astype(o_ref.dtype)


def prepare_params(w1, b1, w2, b2, compute_dtype=jnp.bfloat16):
    """One-time parameter prep (call once, outside the per-step hot path).

    torch layout in:  w1 [H, F], b1 [H], w2 [O, H], b2 [O]
    kernel layout out: w1_t [F, Hp], b1_p [1, Hp], w2_t [Hp, Op], b2_p [1, Op]
    with Hp/Op lane-padded to multiples of 128.  Biases stay f32 (they add
    onto the f32 accumulator); weights/x stream in compute_dtype.
    """
    H, F = w1.shape
    O, _ = w2.shape
    Hp = _round_up(H, _LANE)
    Op = _round_up(O, _LANE)

    # TODO(synk): if the upstream producer can hand x with the feature dim
    # already stored at a multiple of 128, also pad F here (W1 rows) for fully
    # lane-dense x loads; not done per-call to avoid a wrapper copy of x.
    w1_t = jnp.zeros((F, Hp), compute_dtype).at[:, :H].set(
        jnp.transpose(w1).astype(compute_dtype))
    b1_p = jnp.zeros((1, Hp), jnp.float32).at[:, :H].set(b1.astype(jnp.float32))
    w2_t = jnp.zeros((Hp, Op), compute_dtype).at[:H, :O].set(
        jnp.transpose(w2).astype(compute_dtype))
    b2_p = jnp.full((1, Op), _NEG, jnp.float32).at[:, :O].set(b2.astype(jnp.float32))
    return (w1_t, b1_p, w2_t, b2_p, O)


def net_forward(x, prepared, *, block_b=1024, out_dtype=jnp.bfloat16):
    """x: [B, F]; prepared: output of prepare_params. Returns [B, O] out_dtype."""
    w1_t, b1_p, w2_t, b2_p, n_output = prepared
    B, F = x.shape
    Hp = w1_t.shape[1]
    Op = w2_t.shape[1]

    # Batch tile: big enough to amortize per-step overhead, but split into
    # >= 2 grid steps when B allows so "parallel" shards across v7x's 2 TCs.
    tb = min(block_b, _round_up(pl.cdiv(B, 2), 8))
    if tb > B:
        tb = B                      # tiny batch: single full-extent block
    grid = (pl.cdiv(B, tb),)        # ragged last tile handled by Pallas masking

    # Cast to the streaming dtype (no-op if the caller already provides bf16).
    xp = x.astype(w1_t.dtype)

    out = pl.pallas_call(
        mlp_softmax_kernel,
        out_shape=jax.ShapeDtypeStruct((B, Op), out_dtype),
        grid=grid,
        in_specs=[
            pl.BlockSpec((tb, F), lambda i: (i, 0)),     # x: tiled over batch
            pl.BlockSpec((F, Hp), lambda i: (0, 0)),     # W1: VMEM-resident
            pl.BlockSpec((1, Hp), lambda i: (0, 0)),     # b1: VMEM-resident
            pl.BlockSpec((Hp, Op), lambda i: (0, 0)),    # W2: VMEM-resident
            pl.BlockSpec((1, Op), lambda i: (0, 0)),     # b2: VMEM-resident
        ],
        out_specs=pl.BlockSpec((tb, Op), lambda i: (i, 0)),
        compiler_params=pltpu.CompilerParams(
            dimension_semantics=("parallel",)),          # v7x: batch over 2 TCs
    )(xp, w1_t, b1_p, w2_t, b2_p)

    # Drop the padded class lanes (batch has no padding: out_shape was (B, Op)).
    return out[:, :n_output]


if __name__ == "__main__":
    # Small shapes consistent with Net(n_feature, n_hidden, n_output)
    B, n_feature, n_hidden, n_output = 8, 64, 32, 10

    key = jax.random.PRNGKey(0)
    kx, kw1, kb1, kw2, kb2 = jax.random.split(key, 5)

    x = jax.random.normal(kx, (B, n_feature), dtype=jnp.float32)

    # Deterministic params in torch Linear layout: weight [out, in], bias [out]
    w1 = jax.random.normal(kw1, (n_hidden, n_feature), dtype=jnp.float32) * 0.1
    b1 = jax.random.normal(kb1, (n_hidden,), dtype=jnp.float32) * 0.1
    w2 = jax.random.normal(kw2, (n_output, n_hidden), dtype=jnp.float32) * 0.1
    b2 = jax.random.normal(kb2, (n_output,), dtype=jnp.float32) * 0.1

    # One-time prep (transpose + lane-pad + bf16 cast), then a jitted forward.
    params = prepare_params(w1, b1, w2, b2, compute_dtype=jnp.bfloat16)
    fwd = jax.jit(lambda xx: net_forward(xx, params))

    out = jax.block_until_ready(fwd(x))
    out_f32 = out.astype(jnp.float32)

    # Reference in plain JAX f32 (same math as the PyTorch forward).
    h_ref = jnp.maximum(x @ w1.T + b1, 0.0)
    ref = jax.nn.softmax(h_ref @ w2.T + b2, axis=1)

    assert out.shape == (B, n_output)
    # Tolerance covers bf16 streaming/output plus the EUP approximate reciprocal.
    assert jnp.allclose(out_f32, ref, atol=2e-2, rtol=2e-2), \
        float(jnp.max(jnp.abs(out_f32 - ref)))
    # Rows of a softmax must sum to ~1 (within bf16 + approx-recip tolerance).
    assert jnp.allclose(jnp.sum(out_f32, axis=1), 1.0, atol=2e-2)

    print("KERNEL_OK")
</pallas_src>

<mosaic_0001>
module attributes {stable_mosaic.version = 11 : i64} {
  func.func @mlp_softmax_kernel(%arg0: i32, %arg1: memref<8x64xbf16, #tpu.memory_space<vmem>>, %arg2: memref<64x128xbf16, #tpu.memory_space<vmem>>, %arg3: memref<1x128xf32, #tpu.memory_space<vmem>>, %arg4: memref<128x128xbf16, #tpu.memory_space<vmem>>, %arg5: memref<1x128xf32, #tpu.memory_space<vmem>>, %arg6: memref<8x128xbf16, #tpu.memory_space<vmem>>) attributes {dimension_semantics = [#tpu.dimension_semantics<parallel>], iteration_bounds = array<i64: 1>, scalar_prefetch = 0 : i64, scratch_operands = 0 : i64, tpu.core_type = #tpu.core_type<tc>, window_params = [{transform_indices = @transform_0, window_bounds = array<i64: 8, 64>}, {pipeline_mode = #tpu.pipeline_mode<synchronous>, transform_indices = @transform_1, window_bounds = array<i64: 64, 128>}, {pipeline_mode = #tpu.pipeline_mode<synchronous>, transform_indices = @transform_2, window_bounds = array<i64: 1, 128>}, {pipeline_mode = #tpu.pipeline_mode<synchronous>, transform_indices = @transform_3, window_bounds = array<i64: 128, 128>}, {pipeline_mode = #tpu.pipeline_mode<synchronous>, transform_indices = @transform_4, window_bounds = array<i64: 1, 128>}, {transform_indices = @transform_5, window_bounds = array<i64: 8, 128>}]} {
    %c0 = arith.constant 0 : index
    %c0_0 = arith.constant 0 : index
    %0 = vector.load %arg1[%c0, %c0_0] : memref<8x64xbf16, #tpu.memory_space<vmem>>, vector<8x64xbf16>
    %c0_1 = arith.constant 0 : index
    %c0_2 = arith.constant 0 : index
    %1 = vector.load %arg2[%c0_1, %c0_2] : memref<64x128xbf16, #tpu.memory_space<vmem>>, vector<64x128xbf16>
    %cst = arith.constant dense<0.000000e+00> : vector<8x128xf32>
    %2 = tpu.matmul %0, %1, %cst {dimension_numbers = #tpu.dot_dimension_numbers<[1], [0], [0], [1], [0, 0, 1, 1], [], []>} : vector<8x64xbf16>, vector<64x128xbf16>, vector<8x128xf32> -> vector<8x128xf32>
    %c0_3 = arith.constant 0 : index
    %c0_4 = arith.constant 0 : index
    %3 = vector.load %arg3[%c0_3, %c0_4] : memref<1x128xf32, #tpu.memory_space<vmem>>, vector<1x128xf32>
    %4 = vector.broadcast %3 : vector<1x128xf32> to vector<8x128xf32>
    %5 = arith.addf %2, %4 : vector<8x128xf32>
    %cst_5 = arith.constant 0.000000e+00 : f32
    %6 = vector.broadcast %cst_5 : f32 to vector<8x128xf32>
    %7 = arith.maximumf %5, %6 : vector<8x128xf32>
    %8 = arith.truncf %7 : vector<8x128xf32> to vector<8x128xbf16>
    %c0_6 = arith.constant 0 : index
    %c0_7 = arith.constant 0 : index
    %9 = vector.load %arg4[%c0_6, %c0_7] : memref<128x128xbf16, #tpu.memory_space<vmem>>, vector<128x128xbf16>
    %cst_8 = arith.constant dense<0.000000e+00> : vector<8x128xf32>
    %10 = tpu.matmul %8, %9, %cst_8 {dimension_numbers = #tpu.dot_dimension_numbers<[1], [0], [0], [1], [0, 0, 1, 1], [], []>} : vector<8x128xbf16>, vector<128x128xbf16>, vector<8x128xf32> -> vector<8x128xf32>
    %c0_9 = arith.constant 0 : index
    %c0_10 = arith.constant 0 : index
    %11 = vector.load %arg5[%c0_9, %c0_10] : memref<1x128xf32, #tpu.memory_space<vmem>>, vector<1x128xf32>
    %12 = vector.broadcast %11 : vector<1x128xf32> to vector<8x128xf32>
    %13 = arith.addf %10, %12 : vector<8x128xf32>
    %cst_11 = arith.constant dense<0xFF800000> : vector<8xf32>
    %14 = vector.multi_reduction <maximumf>, %13, %cst_11 [1] : vector<8x128xf32> to vector<8xf32>
    %15 = vector.shape_cast %14 : vector<8xf32> to vector<8x1xf32>
    %16 = vector.broadcast %15 : vector<8x1xf32> to vector<8x128xf32>
    %17 = arith.subf %13, %16 : vector<8x128xf32>
    %18 = math.exp %17 : vector<8x128xf32>
    %cst_12 = arith.constant dense<0.000000e+00> : vector<8xf32>
    %19 = vector.multi_reduction <add>, %18, %cst_12 [1] : vector<8x128xf32> to vector<8xf32>
    %20 = vector.shape_cast %19 : vector<8xf32> to vector<8x1xf32>
    %21 = tpu.reciprocal %20 {approx = true} : vector<8x1xf32> -> vector<8x1xf32>
    %22 = vector.broadcast %21 : vector<8x1xf32> to vector<8x128xf32>
    %23 = arith.mulf %18, %22 : vector<8x128xf32>
    %24 = arith.truncf %23 : vector<8x128xf32> to vector<8x128xbf16>
    %c0_13 = arith.constant 0 : index
    %c0_14 = arith.constant 0 : index
    %25 = vector.load %arg6[%c0_13, %c0_14] : memref<8x128xbf16, #tpu.memory_space<vmem>>, vector<8x128xbf16>
    tpu.vector_store %arg6[%c0_13, %c0_14], %24 {strides = array<i32>} : memref<8x128xbf16, #tpu.memory_space<vmem>>, vector<8x128xbf16>,
    return
  }
  func.func @transform_0(%arg0: i32) -> (i32, i32) {
    %c0_i32 = arith.constant 0 : i32
    %c0_i32_0 = arith.constant 0 : i32
    return %arg0, %c0_i32 : i32, i32
  }
  func.func @transform_1(%arg0: i32) -> (i32, i32) {
    %c0_i32 = arith.constant 0 : i32
    %c0_i32_0 = arith.constant 0 : i32
    %c0_i32_1 = arith.constant 0 : i32
    return %c0_i32, %c0_i32_0 : i32, i32
  }
  func.func @transform_2(%arg0: i32) -> (i32, i32) {
    %c0_i32 = arith.constant 0 : i32
    %c0_i32_0 = arith.constant 0 : i32
    %c0_i32_1 = arith.constant 0 : i32
    return %c0_i32, %c0_i32_0 : i32, i32
  }
  func.func @transform_3(%arg0: i32) -> (i32, i32) {
    %c0_i32 = arith.constant 0 : i32
    %c0_i32_0 = arith.constant 0 : i32
    %c0_i32_1 = arith.constant 0 : i32
    return %c0_i32, %c0_i32_0 : i32, i32
  }
  func.func @transform_4(%arg0: i32) -> (i32, i32) {
    %c0_i32 = arith.constant 0 : i32
    %c0_i32_0 = arith.constant 0 : i32
    %c0_i32_1 = arith.constant 0 : i32
    return %c0_i32, %c0_i32_0 : i32, i32
  }
  func.func @transform_5(%arg0: i32) -> (i32, i32) {
    %c0_i32 = arith.constant 0 : i32
    %c0_i32_0 = arith.constant 0 : i32
    return %arg0, %c0_i32 : i32, i32
  }
}

</mosaic_0001>

<bundles_post_ra>
// kernel: _lambda_.1
= control target key start
LH: loop header
LB: loop body
LE: loop exit
PB: predicated region body
PF: predicated region fallthrough
CT: control target
= control target key end

     0   :  { %10 = vsyncpa [#allocation3], 0  ;;  %s512_s0 = inlined_call_operand.vmem [shape: bf16[8,64], index: 0, kind: input, shape index: {}]   ;;  %s513_s1 = inlined_call_operand.hbm [shape: bf16[64,128], index: 1, kind: input, shape index: {}]   ;;  %s514_s2 = inlined_call_operand.vmem [shape: f32[1,128], index: 2, kind: input, shape index: {}]   ;;  %s515_s3 = inlined_call_operand.hbm [shape: bf16[128,128], index: 3, kind: input, shape index: {}]   ;;  %s516_s4 = inlined_call_operand.vmem [shape: f32[1,128], index: 4, kind: input, shape index: {}]   ;;  %s517_s5 = inlined_call_operand.hbm [shape: bf16[8,128], index: 5, kind: output, shape index: {}]  }
   0x1   :  { %11 = vsyncpa [#allocation6], 0 }
   0x2   :  { %12 = vsyncpa [#allocation4], 0  ;;  %s430_s18 = smov [#allocation2]   ;;  %s358_s22 = scalar_lea.hbm %s513_s1, 512 }
   0x3   :  { %s20_s19 = sshll.u32 %s430_s18, 4  ;;  %p359_p0 = scmp.ne.s32.totalorder %s513_s1, %s358_s22  ;;  %s21_s19 = int_to_ptr.vmem [resolvable:$true] %s20_s19 }
   0x4   :  { %p362_p1 = scmp.lt.u32.totalorder %s358_s22, %s513_s1 }
   0x6   :  { %p364_p2 = pnand %p362_p1, %p359_p0 }
   0x8   :  { %367 = shalt.err (!%p364_p2)
}
   0x9   :  { %s368_s27 = scalar_lea.vmem %s21_s19, 512  ;;  %p373_p4 = scmp.lt.s32.totalorder %s21_s19, %s21_s19 }
   0xa   :  { %p369_p3 = scmp.ne.s32.totalorder %s21_s19, %s368_s27  ;;  %p374_p5 = scmp.lt.s32.totalorder %s368_s27, %s368_s27 }
   0xc   :  { %p375_p6 = por %p374_p5, %p373_p4 }
   0xe   :  { %p376_p7 = pnand %p375_p6, %p369_p3 }
  0x10   :  { %379 = shalt.err (!%p376_p7)
}
  0x11   :  { %s431_s28 = smov 64   ;;  %s432_s29 = smov 4  }
  0x12   :  { %26 = dma.hbm_to_vmem [thread:$0]  %s513_s1, 512, %s21_s19, [#allocation3], %s431_s28, %s431_s28, %s432_s29  }
  0x13   :  { %s433_s7 = smov [#allocation5]   ;;  %s380_s11 = scalar_lea.hbm %s515_s3, 1024 }
  0x14   :  { %s34_s8 = sshll.u32 %s433_s7, 4  ;;  %p381_p8 = scmp.ne.s32.totalorder %s515_s3, %s380_s11  ;;  %s35_s8 = int_to_ptr.vmem [resolvable:$true] %s34_s8 }
  0x15   :  { %p384_p9 = scmp.lt.u32.totalorder %s380_s11, %s515_s3 }
  0x17   :  { %p386_p10 = pnand %p384_p9, %p381_p8 }
  0x19   :  { %389 = shalt.err (!%p386_p10)
}
  0x1a   :  { %s390_s16 = scalar_lea.vmem %s35_s8, 1024  ;;  %p395_p12 = scmp.lt.s32.totalorder %s35_s8, %s35_s8 }
  0x1b   :  { %p391_p11 = scmp.ne.s32.totalorder %s35_s8, %s390_s16  ;;  %p396_p13 = scmp.lt.s32.totalorder %s390_s16, %s390_s16 }
  0x1d   :  { %p397_p0 = por %p396_p13, %p395_p12 }
  0x1f   :  { %p398_p1 = pnand %p397_p0, %p391_p11 }
  0x21   :  { %401 = shalt.err (!%p398_p1)
}
  0x22   :  { %40 = dma.hbm_to_vmem [thread:$0]  %s515_s3, 1024, %s35_s8, [#allocation6], %s431_s28, %s431_s28, %s432_s29  }
  0x23   :  { %424 = dma.done.wait [#allocation3], 512  }
  0x24   :  { %425 = vsyncadd [#allocation3], 4294966784 }
  0x25   :  { %426 = dma.done.wait [#allocation6], 1024  }
  0x26   :  { %427 = vsyncadd [#allocation6], 4294966272  ;;  %v434_v0 = vmov 0.0   ;;  %vm435_vm0 = vmmov 0   ;;  %v342_v1 = vld [vmem:[#allocation2] sm:$0xff]   ;;  %v343_v2 = vld [vmem:[#allocation2 + $0x8] sm:$0xff]  }
  0x27   :  { %303 = vmatprep.subr.bf16.mxu0 %v434_v0  ;;  %311 = vmatprep.mubr.msk.bf16.mxu0 %vm435_vm0, %v434_v0  ;;  %v346_v3 = vld [vmem:[#allocation5] sm:$0xff]   ;;  %v344_v4 = vld [vmem:[#allocation2 + $0x10] sm:$0xff]   ;;  %v347_v5 = vld [vmem:[#allocation5 + $0x8] sm:$0xff]   ;;  %vm90_vm1 = vcmask 523264  }
  0x28   :  { %315 = vmatprep.subr.bf16.mxu1 %v434_v0  ;;  %331 = vmatprep.mubr.msk.bf16.mxu1 %vm435_vm0, %v434_v0  ;;  %v345_v6 = vld [vmem:[#allocation2 + $0x18] sm:$0xff]   ;;  %v348_v7 = vld [vmem:[#allocation5 + $0x10] sm:$0xff]   ;;  %v50_v8 = vld [vmem:[%s512_s0] sm:$0xf] }
  0x29   :  { %304 = vmatpush3.bf16.msra.mxu0 %v342_v1  ;;  %316 = vmatpush3.bf16.msra.mxu1 %v346_v3  ;;  %v349_v9 = vld [vmem:[#allocation5 + $0x18] sm:$0xff]   ;;  %v350_v10 = vld [vmem:[#allocation5 + $0x20] sm:$0xff]   ;;  %v351_v11 = vld [vmem:[#allocation5 + $0x28] sm:$0xff]  }
  0x2a   :  { %305 = vmatprep.subr.bf16.mxu0 %v434_v0  ;;  %317 = vmatprep.subr.bf16.mxu1 %v434_v0  ;;  %v352_v12 = vld [vmem:[#allocation5 + $0x30] sm:$0xff]   ;;  %v353_v13 = vld [vmem:[#allocation5 + $0x38] sm:$0xff]   ;;  %v274_v14 = vld [vmem:[%s514_s2] ss:$0 sm:$0xff]  ;;  %s436_s2 = smov [#allocation7]  }
  0x2b   :  { %v280_v22 = vld [vmem:[%s516_s4] ss:$0 sm:$0xff]  ;;  %s264_s22 = sshll.u32 %s436_s2, 4  ;;  %s265_s22 = int_to_ptr.vmem [resolvable:$true] %s264_s22 }
  0x2c   :  { %s402_s4 = scalar_lea.vmem %s265_s22, 64  ;;  %p407_p3 = scmp.lt.s32.totalorder %s265_s22, %s265_s22 }
  0x2d   :  { %306 = vmatpush3.bf16.msra.mxu0 %v343_v2  ;;  %318 = vmatpush3.bf16.msra.mxu1 %v347_v5  ;;  %p403_p2 = scmp.ne.s32.totalorder %s265_s22, %s402_s4  ;;  %p408_p4 = scmp.lt.s32.totalorder %s402_s4, %s402_s4 }
  0x2e   :  { %307 = vmatprep.subr.bf16.mxu0 %v434_v0  ;;  %319 = vmatprep.subr.bf16.mxu1 %v434_v0 }
  0x2f   :  { %p409_p5 = por %p408_p4, %p407_p3 }
  0x31   :  { %308 = vmatpush3.bf16.msra.mxu0 %v344_v4  ;;  %320 = vmatpush3.bf16.msra.mxu1 %v348_v7  ;;  %p410_p6 = pnand %p409_p5, %p403_p2 }
  0x32   :  { %309 = vmatprep.subr.bf16.mxu0 %v434_v0  ;;  %321 = vmatprep.subr.bf16.mxu1 %v434_v0 }
  0x35   :  { %310 = vmatpush3.bf16.msra.mxu0 %v345_v6  ;;  %322 = vmatpush3.bf16.msra.mxu1 %v349_v9 }
  0x36   :  { %323 = vmatprep.subr.bf16.mxu1 %v434_v0 }
  0x38   :  { %312 = vmatmul.mubr.msk.bf16.vlgmr.msra.gmra.mrb[0].mxu0 %vm90_vm1, %v50_v8 }
  0x39   :  { %324 = vmatpush3.bf16.msra.mxu1 %v350_v10 }
  0x3a   :  { %325 = vmatprep.subr.bf16.mxu1 %v434_v0 }
  0x3d   :  { %326 = vmatpush3.bf16.msra.mxu1 %v351_v11 }
  0x3e   :  { %327 = vmatprep.subr.bf16.mxu1 %v434_v0 }
  0x41   :  { %328 = vmatpush3.bf16.msra.mxu1 %v352_v12 }
  0x42   :  { %329 = vmatprep.subr.bf16.mxu1 %v434_v0 }
  0x45   :  { %330 = vmatpush3.bf16.msra.mxu1 %v353_v13 }
 0x10b   :  { %v128_v15 = vpop.f32.mrb[0].mxu0 }
 0x10c   :  { %v129_v16 = vadd.f32 %v274_v14, %v128_v15  ;;  %v313_v17 = vpop.f32.mrb[1].mxu0 }
 0x10d   :  { %v131_v18 = vpop.f32.mrb[2].mxu0 }
 0x10e   :  { %v134_v19 = vmax.f32 %v129_v16, 0.0  ;;  %v314_v20 = vpop.f32.mrb[3].mxu0 }
 0x110   :  { %v135_v21 = vpack.c.bf16 %v134_v19, %v134_v19 }
 0x112   :  { %332 = vmatmul.mubr.bf16.vlgmr.msra.gmra.mrb[0].mxu1 %v135_v21 }
 0x1e5   :  { %v241_v23 = vpop.f32.mrb[0].mxu1 }
 0x1e6   :  { %v242_v24 = vadd.f32 %v280_v22, %v241_v23  ;;  %v333_v25 = vpop.f32.mrb[1].mxu1 }
 0x1e7   :  { %v244_v26 = vpop.f32.mrb[2].mxu1 }
 0x1e8   :  { %247 = vmax.xlane.f32.xlu0 %v242_v24  ;;  %v334_v27 = vpop.f32.mrb[3].mxu1 }
 0x275   :  { %v248_v28 = vpop.xlane.xlu0 %247 }
 0x276   :  { %v249_v29 = vsub.f32 %v242_v24, %v248_v28 }
 0x278   :  { %v250_v30 = vmul.f32 1.442695, %v249_v29 }
 0x27a   :  { %354 = vpow2.f32 %v250_v30 }
 0x284   :  { %v355_v31 = vpop.eup %354 }
 0x285   :  { %252 = vadd.xlane.f32.xlu0 %v355_v31 }
 0x312   :  { %v253_v32 = vpop.xlane.xlu0 %252 }
 0x313   :  { %356 = vrcp.f32 %v253_v32 }
 0x31d   :  { %v357_v33 = vpop.eup %356 }
 0x31e   :  { %v255_v34 = vmul.f32 %v357_v33, %v355_v31 }
 0x320   :  { %v256_v35 = vpack.c.bf16 %v255_v34, %v255_v34 }
 0x322   :  { %257 = vst [vmem:[#allocation7] sm:$0xf] %v256_v35 }
 0x323   :  { %413 = shalt.err (!%p410_p6)
}
 0x324   :  { %s414_s25 = scalar_lea.hbm %s517_s5, 64 }
 0x325   :  { %p415_p7 = scmp.ne.s32.totalorder %s517_s5, %s414_s25  ;;  %p418_p8 = scmp.lt.u32.totalorder %s414_s25, %s517_s5 }
 0x327   :  { %p420_p9 = pnand %p418_p8, %p415_p7 }
 0x329   :  { %423 = shalt.err (!%p420_p9)
}
 0x32a   :  { %267 = dma.vmem_to_hbm [thread:$0]  %s265_s22, 64, %s517_s5, [#allocation4]  }
 0x32b   :  { %428 = dma.done.wait [#allocation4], 64  }
 0x32c   :  { %429 = vsyncadd [#allocation4], 4294967232 }
 0x32d   :  { %271 = vsyncpa [#allocation3], 1 }
 0x32e   :  { %272 = vsyncpa [#allocation6], 1 }
 0x32f   :  { %273 = vsyncpa [#allocation4], 1 }

</bundles_post_ra>
